<compile_context>
chip_gen: v5e
topology: v5e:2x2
jax: 0.10.0
libtpu: 0.0.40
codegen_flags: <defaults>
</compile_context>

<pallas_src>
import functools

import jax
import jax.numpy as jnp
from jax.experimental import pallas as pl
from jax.experimental.pallas import tpu as pltpu


def _round_up(x, m):
    return ((x + m - 1) // m) * m


def _cdiv(a, b):
    return (a + b - 1) // b


# -----------------------------------------------------------------------------
# Kernel: one MXU matmul per (out_tile, batch_tile, k_tile), f32 accumulation
# in VMEM scratch, cast + store on the last K step.
# -----------------------------------------------------------------------------
def linreg_kernel(x_ref, wt_ref, o_ref, acc_ref):
    k = pl.program_id(2)

    @pl.when(k == 0)
    def _():
        acc_ref[...] = jnp.zeros_like(acc_ref)

    # In-kernel cast to the weight compute dtype (bf16): VPU cast is free
    # filler under the MXU / DMA and avoids a host-side materialized copy of x.
    acc_ref[...] += jnp.dot(
        x_ref[...].astype(wt_ref.dtype),
        wt_ref[...],
        preferred_element_type=jnp.float32,
    )

    @pl.when(k == pl.num_programs(2) - 1)
    def _():
        o_ref[...] = acc_ref[...].astype(o_ref.dtype)


# -----------------------------------------------------------------------------
# One-time weight prep (cache the result per weight — do NOT call per forward).
# -----------------------------------------------------------------------------
def prepare_weight(w, compute_dtype=jnp.bfloat16):
    """w: [D_out, D_in] (PyTorch nn.Linear layout) -> padded transposed slab.

    Returns wt: [round_up(D_in,128), round_up(D_out,128)] in compute_dtype.
    Zero padding contributes exactly 0 to the matmul.
    """
    d_out, d_in = w.shape
    k_p = _round_up(d_in, 128)
    n_p = _round_up(d_out, 128)
    wt = jnp.zeros((k_p, n_p), dtype=compute_dtype)
    wt = wt.at[:d_in, :d_out].set(w.T.astype(compute_dtype))
    return wt


def _pick_tiles(B, k_p, n_p):
    # Batch tile: single block when small; otherwise a near-even split rounded
    # to 16 rows (bf16 sublane packing) to minimize padding waste.
    if B <= 512:
        tm = max(B, 1)
    else:
        n_i = _cdiv(B, 512)
        tm = _round_up(_cdiv(B, n_i), 16)
    tn = min(n_p, 512)
    tk = min(k_p, 512)
    return tm, tn, tk


def _forward_impl(x, wt, d_out):
    """y = x @ W.T with the padded/transposed cached weight `wt`."""
    B, d_in = x.shape
    k_p, n_p = wt.shape
    out_dtype = x.dtype

    tm, tn, tk = _pick_tiles(B, k_p, n_p)
    B_p = _round_up(B, tm)

    # Fast path: already aligned -> pass x straight through (no padded copy).
    if d_in != k_p or B_p != B:
        # Pad (and cast, halving the materialized bytes) inside the jitted
        # forward; zeros contribute 0 to the contraction.
        xp = jnp.zeros((B_p, k_p), dtype=wt.dtype)
        xp = xp.at[:B, :d_in].set(x.astype(wt.dtype))
    else:
        xp = x

    n_i = B_p // tm
    n_j = n_p // tn
    n_k = k_p // tk
    # Weight-stationary order: out-feature tiles outermost, batch tiles middle,
    # reduction innermost ("arbitrary"). With n_k == 1 the weight block index
    # is constant across batch tiles -> no weight re-DMA per batch tile.
    grid = (n_j, n_i, n_k)

    # Honest traffic estimate for XLA's scheduler.
    w_reads = 1 if n_k == 1 else n_i
    cost = pl.CostEstimate(
        flops=2 * B_p * k_p * n_p,
        bytes_accessed=(
            n_j * B_p * k_p * xp.dtype.itemsize
            + w_reads * k_p * n_p * wt.dtype.itemsize
            + B_p * n_p * jnp.dtype(out_dtype).itemsize
        ),
        transcendentals=0,
    )

    # Explicit VMEM budget: double-buffered x / wt / out blocks + f32 acc.
    vmem_needed = (
        2 * tm * tk * xp.dtype.itemsize
        + 2 * tk * tn * wt.dtype.itemsize
        + 2 * tm * tn * jnp.dtype(out_dtype).itemsize
        + tm * tn * 4
    )
    vmem_limit = int(min(max(4 * vmem_needed, 32 * 1024 * 1024),
                         48 * 1024 * 1024))

    y_p = pl.pallas_call(
        linreg_kernel,
        out_shape=jax.ShapeDtypeStruct((B_p, n_p), out_dtype),
        grid_spec=pltpu.PrefetchScalarGridSpec(
            num_scalar_prefetch=0,
            grid=grid,
            in_specs=[
                pl.BlockSpec((tm, tk), lambda j, i, k: (i, k)),   # activations
                pl.BlockSpec((tk, tn), lambda j, i, k: (k, j)),   # weight slab
            ],
            out_specs=pl.BlockSpec((tm, tn), lambda j, i, k: (i, j)),
            scratch_shapes=[pltpu.VMEM((tm, tn), jnp.float32)],
        ),
        compiler_params=pltpu.CompilerParams(
            dimension_semantics=("parallel", "parallel", "arbitrary"),
            vmem_limit_bytes=vmem_limit,
        ),
        cost_estimate=cost,
    )(xp, wt)

    if B_p != B or n_p != d_out:
        y_p = y_p[:B, :d_out]
    return y_p


_forward = jax.jit(_forward_impl, static_argnums=(2,))


class LinearRegressionModel:
    """Pallas equivalent of nn.Linear(input_size, output_size, bias=False).

    Weight is transposed / padded / cast once at construction and reused on
    every call. Default compute dtype is bf16 with f32 MXU accumulation; pass
    compute_dtype=jnp.float32 for exact f32 parity with PyTorch.
    """

    def __init__(self, w, compute_dtype=jnp.bfloat16):
        self.d_out, self.d_in = w.shape
        self.wt = prepare_weight(w, compute_dtype)   # cached across calls

    def __call__(self, x):
        assert x.shape[-1] == self.d_in, "input feature mismatch"
        return _forward(x, self.wt, self.d_out)


if __name__ == "__main__":
    # Small shapes consistent with nn.Linear(input_size, output_size, bias=False).
    batch, input_size, output_size = 16, 32, 16

    key = jax.random.PRNGKey(0)
    kx, kw = jax.random.split(key)

    x = jax.random.normal(kx, (batch, input_size), dtype=jnp.float32)

    # Deterministic init mimicking PyTorch's uniform(-1/sqrt(fan_in), 1/sqrt(fan_in)).
    bound = 1.0 / jnp.sqrt(jnp.float32(input_size))
    w = jax.random.uniform(
        kw, (output_size, input_size), dtype=jnp.float32, minval=-bound, maxval=bound
    )

    model = LinearRegressionModel(w)
    y = jax.block_until_ready(model(x))

    # Reference at the kernel's compute precision (bf16 operands, f32 acc).
    x_bf = x.astype(jnp.bfloat16).astype(jnp.float32)
    w_bf = w.astype(jnp.bfloat16).astype(jnp.float32)
    y_ref = x_bf @ w_bf.T

    assert y.shape == (batch, output_size)
    assert jnp.allclose(y, y_ref, atol=1e-2, rtol=1e-2), float(
        jnp.max(jnp.abs(y - y_ref))
    )

    print("KERNEL_OK")
</pallas_src>

<mosaic_0001>
module attributes {stable_mosaic.version = 11 : i64} {
  func.func @linreg_kernel(%arg0: i32, %arg1: i32, %arg2: i32, %arg3: memref<16x128xbf16, #tpu.memory_space<vmem>>, %arg4: memref<128x128xbf16, #tpu.memory_space<vmem>>, %arg5: memref<16x128xf32, #tpu.memory_space<vmem>>, %arg6: memref<16x128xf32, #tpu.memory_space<vmem>>) attributes {dimension_semantics = [#tpu.dimension_semantics<parallel>, #tpu.dimension_semantics<parallel>, #tpu.dimension_semantics<arbitrary>], iteration_bounds = array<i64: 1, 1, 1>, scalar_prefetch = 0 : i64, scratch_operands = 1 : i64, tpu.core_type = #tpu.core_type<tc>, window_params = [{transform_indices = @transform_0, window_bounds = array<i64: 16, 128>}, {transform_indices = @transform_1, window_bounds = array<i64: 128, 128>}, {transform_indices = @transform_2, window_bounds = array<i64: 16, 128>}]} {
    %c0_i32 = arith.constant 0 : i32
    %0 = arith.cmpi eq, %arg2, %c0_i32 : i32
    %1 = arith.extui %0 : i1 to i32
    %c0_i32_0 = arith.constant 0 : i32
    %2 = arith.cmpi ne, %1, %c0_i32_0 : i32
    scf.if %2 {
      %cst_10 = arith.constant 0.000000e+00 : f32
      %12 = vector.broadcast %cst_10 : f32 to vector<16x128xf32>
      %c0_11 = arith.constant 0 : index
      %c0_12 = arith.constant 0 : index
      %13 = vector.load %arg6[%c0_11, %c0_12] : memref<16x128xf32, #tpu.memory_space<vmem>>, vector<16x128xf32>
      tpu.vector_store %arg6[%c0_11, %c0_12], %12 {strides = array<i32>} : memref<16x128xf32, #tpu.memory_space<vmem>>, vector<16x128xf32>,
    } else {
    }
    %c0 = arith.constant 0 : index
    %c0_1 = arith.constant 0 : index
    %3 = vector.load %arg6[%c0, %c0_1] : memref<16x128xf32, #tpu.memory_space<vmem>>, vector<16x128xf32>
    %c0_2 = arith.constant 0 : index
    %c0_3 = arith.constant 0 : index
    %4 = vector.load %arg3[%c0_2, %c0_3] : memref<16x128xbf16, #tpu.memory_space<vmem>>, vector<16x128xbf16>
    %c0_4 = arith.constant 0 : index
    %c0_5 = arith.constant 0 : index
    %5 = vector.load %arg4[%c0_4, %c0_5] : memref<128x128xbf16, #tpu.memory_space<vmem>>, vector<128x128xbf16>
    %cst = arith.constant dense<0.000000e+00> : vector<16x128xf32>
    %6 = tpu.matmul %4, %5, %cst {dimension_numbers = #tpu.dot_dimension_numbers<[1], [0], [0], [1], [0, 0, 1, 1], [], []>} : vector<16x128xbf16>, vector<128x128xbf16>, vector<16x128xf32> -> vector<16x128xf32>
    %7 = arith.addf %3, %6 : vector<16x128xf32>
    %c0_6 = arith.constant 0 : index
    %c0_7 = arith.constant 0 : index
    %8 = vector.load %arg6[%c0_6, %c0_7] : memref<16x128xf32, #tpu.memory_space<vmem>>, vector<16x128xf32>
    tpu.vector_store %arg6[%c0_6, %c0_7], %7 {strides = array<i32>} : memref<16x128xf32, #tpu.memory_space<vmem>>, vector<16x128xf32>,
    %c0_i32_8 = arith.constant 0 : i32
    %9 = arith.cmpi eq, %arg2, %c0_i32_8 : i32
    %10 = arith.extui %9 : i1 to i32
    %c0_i32_9 = arith.constant 0 : i32
    %11 = arith.cmpi ne, %10, %c0_i32_9 : i32
    scf.if %11 {
      %c0_10 = arith.constant 0 : index
      %c0_11 = arith.constant 0 : index
      %12 = vector.load %arg6[%c0_10, %c0_11] : memref<16x128xf32, #tpu.memory_space<vmem>>, vector<16x128xf32>
      %c0_12 = arith.constant 0 : index
      %c0_13 = arith.constant 0 : index
      %13 = vector.load %arg5[%c0_12, %c0_13] : memref<16x128xf32, #tpu.memory_space<vmem>>, vector<16x128xf32>
      tpu.vector_store %arg5[%c0_12, %c0_13], %12 {strides = array<i32>} : memref<16x128xf32, #tpu.memory_space<vmem>>, vector<16x128xf32>,
    } else {
    }
    return
  }
  func.func @transform_0(%arg0: i32, %arg1: i32, %arg2: i32) -> (i32, i32) {
    %c0_i32 = arith.constant 0 : i32
    return %arg1, %arg2 : i32, i32
  }
  func.func @transform_1(%arg0: i32, %arg1: i32, %arg2: i32) -> (i32, i32) {
    %c0_i32 = arith.constant 0 : i32
    return %arg2, %arg0 : i32, i32
  }
  func.func @transform_2(%arg0: i32, %arg1: i32, %arg2: i32) -> (i32, i32) {
    %c0_i32 = arith.constant 0 : i32
    return %arg1, %arg0 : i32, i32
  }
}

</mosaic_0001>

<bundles_post_ra>
// kernel: _forward_impl.1
= control target key start
LH: loop header
LB: loop body
LE: loop exit
PB: predicated region body
PF: predicated region fallthrough
CT: control target
= control target key end

     0   :  { %7 = vsyncpa [#allocation4], 0  ;;  %s285_s0 = inlined_call_operand.vmem [shape: bf16[16,128], index: 0, kind: input, shape index: {}]   ;;  %s286_s1 = inlined_call_operand.hbm [shape: bf16[128,128], index: 1, kind: input, shape index: {}]   ;;  %s287_s2 = inlined_call_operand.hbm [shape: f32[16,128], index: 2, kind: output, shape index: {}]  }
   0x1   :  { %8 = vsyncpa [#allocation5], 0  ;;  %s15_s11 = sshll.u32 %s286_s1, 4  ;;  %s255_s12 = smov [#allocation3]   ;;  %s16_s11 = int_to_ptr.hbm [resolvable:$true] %s15_s11 }
   0x2   :  { %s17_s13 = sshll.u32 %s255_s12, 4  ;;  %s256_s14 = smov 64   ;;  %s18_s13 = int_to_ptr.vmem [resolvable:$true] %s17_s13 }
   0x3   :  { %s257_s15 = smov 4  }
   0x4   :  { %23 = dma.hbm_to_vmem [thread:$0]  %s16_s11, 1024, %s18_s13, [#allocation4], %s256_s14, %s256_s14, %s257_s15  }
   0x5   :  { %251 = dma.done.wait [#allocation4], 1024  }
   0x6   :  { %252 = vsyncadd [#allocation4], 4294966272  ;;  %v196_v0 = vld [vmem:[#allocation3 + $0x38] sm:$0xff]  ;;  %v195_v1 = vld [vmem:[#allocation3 + $0x30] sm:$0xff]  ;;  %s258_s17 = smov [#allocation6]   ;;  %s139_s21 = sshll.u32 %s287_s2, 4  ;;  %s140_s21 = int_to_ptr.hbm [resolvable:$true] %s139_s21 }
   0x7   :  { %108 = vmatpush.bf16.msra.mxu0 %v196_v0  ;;  %v194_v2 = vld [vmem:[#allocation3 + $0x28] sm:$0xff]  ;;  %v193_v3 = vld [vmem:[#allocation3 + $0x20] sm:$0xff]  ;;  %v192_v4 = vld [vmem:[#allocation3 + $0x18] sm:$0xff]  ;;  %s137_s18 = sshll.u32 %s258_s17, 4  ;;  %s259_s22 = smov 128   ;;  %s138_s18 = int_to_ptr.vmem [resolvable:$true] %s137_s18 }
   0x8   :  { %v191_v5 = vld [vmem:[#allocation3 + $0x10] sm:$0xff]  ;;  %v190_v6 = vld [vmem:[#allocation3 + $0x8] sm:$0xff]  ;;  %v189_v7 = vld [vmem:[#allocation3] sm:$0xff]  ;;  %s260_s23 = smov 8  }
   0x9   :  { %v188_v8 = vld [vmem:[%s285_s0] sm:$0xff] }
   0xb   :  { %109 = vmatpush.bf16.msra.mxu0 %v195_v1 }
   0xf   :  { %110 = vmatpush.bf16.msra.mxu0 %v194_v2 }
  0x13   :  { %111 = vmatpush.bf16.msra.mxu0 %v193_v3 }
  0x17   :  { %112 = vmatpush.bf16.msra.mxu0 %v192_v4 }
  0x1b   :  { %113 = vmatpush.bf16.msra.mxu0 %v191_v5 }
  0x1f   :  { %114 = vmatpush.bf16.msra.mxu0 %v190_v6 }
  0x23   :  { %115 = vmatpush.bf16.msra.mxu0 %v189_v7 }
  0x26   :  { %116 = vmatmul.bf16.vlgmr.msra.gmra.mxu0 %v188_v8 }
  0xa3   :  { %v117_v9 = vpop.f32.mrf.mxu0 }
  0xa4   :  { %131 = vst [vmem:[#allocation6] sm:$0xff] %v117_v9 }
  0xab   :  { %v119_v10 = vpop.f32.mrf.mxu0 }
  0xac   :  { %132 = vst [vmem:[#allocation6 + $0x8] sm:$0xff] %v119_v10 }
  0xad   :  { %145 = dma.vmem_to_hbm [thread:$0]  %s138_s18, 256, %s140_s21, [#allocation5], %s259_s22, %s259_s22, %s260_s23  }
  0xae   :  { %253 = dma.done.wait [#allocation5], 256  }
  0xaf   :  { %254 = vsyncadd [#allocation5], 4294967040 }
  0xb0   :  { %150 = vsyncpa [#allocation4], 1 }
  0xb1   :  { %151 = vsyncpa [#allocation5], 1 }

</bundles_post_ra>
